<compile_context>
chip_gen: v5e
topology: v5e:2x2
jax: 0.10.0
libtpu: 0.0.40
codegen_flags: <defaults>
</compile_context>

<pallas_src>
import functools
import math

import jax
import jax.numpy as jnp
import numpy as np
from jax.experimental import pallas as pl
from jax.experimental.pallas import tpu as pltpu


def _round_up(a, b):
    return -(-a // b) * b


def _pe_dropout_kernel(rate_ref, offs_ref, phase_ref, *rest,
                       block_rows, ppr, p, apply_dropout):
    """One (block_rows, lane_w) tile of dropout(pe) in the lane-folded layout.

    Flat element (r, c) of grid step i corresponds to table entry
        pos = (i * block_rows + r) * ppr + (c // d_model)
        col = c %  d_model
    The per-lane terms (c // d_model, rate(col), phase(col)) are grid-invariant
    and arrive as three (1, lane_w) rows, so the kernel is just
        sin(pos * rate + phase)          # cos(x) == sin(x + pi/2)
    i.e. a single transcendental per element, plus the dropout select.
    """
    if apply_dropout:
        rand_ref, out_ref = rest
    else:
        (out_ref,) = rest

    i = pl.program_id(0)
    # Base position of each sublane row of this tile (exact small integers).
    row = jax.lax.broadcasted_iota(jnp.int32, (block_rows, 1), 0) + i * block_rows
    pos = (row * ppr).astype(jnp.float32) + offs_ref[...]          # (block_rows, lane_w)
    angle = pos * rate_ref[...] + phase_ref[...]
    pe = jnp.sin(angle)

    if apply_dropout:
        keep = rand_ref[...] >= jnp.float32(p)                     # keep prob = 1 - p
        pe = jnp.where(keep, pe * jnp.float32(1.0 / (1.0 - p)), jnp.zeros_like(pe))

    out_ref[...] = pe.astype(out_ref.dtype)


def positional_encoding_forward(x, *, d_model, max_len, p=0.1, train=True, seed=0):
    """Pallas equivalent of PositionalEncoding(d_model, p, max_len).forward(x).

    Exactly like the PyTorch module, the input x is ignored; the result is
    dropout(pe) with shape (max_len, d_model), dtype float32.
    In eval mode (train=False) the kernel skips the dropout path entirely.
    """
    del x  # forward() ignores its input, matching the reference module.
    assert d_model % 2 == 0, "d_model must be even (sin/cos interleave)"

    apply_dropout = bool(train) and float(p) > 0.0

    # ---- lane-dense folded layout: last dim is a multiple of 128 -------------
    if d_model % 128 == 0:
        lane_w = d_model
    else:
        lane_w = d_model * 128 // math.gcd(d_model, 128)
    ppr = lane_w // d_model                       # positions packed per flat row
    rows_needed = -(-max_len // ppr)              # cdiv

    # Big row blocks, but keep each (double-buffered) VMEM buffer <= 4 MiB so the
    # pipeline fits the scoped-VMEM defaults on v5e / v6e / v7x.
    max_rows = max(8, ((4 * 1024 * 1024) // (lane_w * 4)) // 8 * 8)
    block_rows = min(512, max_rows, _round_up(rows_needed, 8))
    rows_pad = _round_up(rows_needed, block_rows)
    grid = (rows_pad // block_rows,)

    # Grid-invariant per-lane rows, hoisted out of the kernel (no exp / int ops
    # inside the kernel).
    lane = np.arange(lane_w)
    col = lane % d_model
    offs = (lane // d_model).astype(np.float32)                     # pos offset in a flat row
    rate = np.exp((col // 2 * 2).astype(np.float64)
                  * (-math.log(10000.0) / d_model)).astype(np.float32)
    phase = np.where(col % 2 == 0, 0.0, np.pi / 2.0).astype(np.float32)
    rate_row = jnp.asarray(rate)[None, :]
    offs_row = jnp.asarray(offs)[None, :]
    phase_row = jnp.asarray(phase)[None, :]

    row_spec = pl.BlockSpec((1, lane_w), lambda i: (0, 0))
    tile_spec = pl.BlockSpec((block_rows, lane_w), lambda i: (i, 0))

    in_specs = [row_spec, row_spec, row_spec]
    operands = [rate_row, offs_row, phase_row]
    if apply_dropout:
        # Portable dropout randomness (works on TPU and under interpret mode).
        rand = jax.random.uniform(jax.random.PRNGKey(seed), (rows_pad, lane_w),
                                  dtype=jnp.float32)
        in_specs.append(tile_spec)
        operands.append(rand)

    kernel = functools.partial(
        _pe_dropout_kernel,
        block_rows=block_rows, ppr=ppr, p=float(p), apply_dropout=apply_dropout,
    )

    flat = pl.pallas_call(
        kernel,
        out_shape=jax.ShapeDtypeStruct((rows_pad, lane_w), jnp.float32),
        grid_spec=pltpu.PrefetchScalarGridSpec(
            num_scalar_prefetch=0,
            grid=grid,
            in_specs=in_specs,
            out_specs=tile_spec,
        ),
        compiler_params=pltpu.CompilerParams(
            dimension_semantics=("parallel",),   # independent blocks -> megacore on v7x
        ),
    )(*operands)

    # Layout plumbing only: unfold lanes back to (max_len, d_model).
    return flat.reshape(rows_pad * ppr, d_model)[:max_len]


def _reference_pe(max_len, d_model):
    pe = np.zeros((max_len, d_model), dtype=np.float32)
    position = np.arange(0, max_len, dtype=np.float64)[:, None]
    div_term = np.exp(np.arange(0, d_model, 2).astype(np.float64)
                      * (-math.log(10000.0) / d_model))
    pe[:, 0::2] = np.sin(position * div_term)
    pe[:, 1::2] = np.cos(position * div_term)
    return pe


if __name__ == "__main__":
    # Small shapes consistent with the module: x is (batch, seq, d_model) and ignored.
    batch, seq, d_model, max_len = 2, 8, 32, 64
    x = jax.random.normal(jax.random.PRNGKey(0), (batch, seq, d_model), dtype=jnp.float32)
    ref = _reference_pe(max_len, d_model)

    # Eval mode: dropout is identity, so the result must equal the sinusoid table.
    pe_eval = jax.block_until_ready(
        positional_encoding_forward(x, d_model=d_model, max_len=max_len, p=0.1, train=False))
    assert pe_eval.shape == (max_len, d_model) and pe_eval.dtype == jnp.float32
    np.testing.assert_allclose(np.asarray(pe_eval), ref, rtol=1e-5, atol=5e-5)

    # Train mode: dropped entries are exactly 0, survivors are pe / (1 - p).
    p = 0.1
    out = jax.block_until_ready(
        positional_encoding_forward(x, d_model=d_model, max_len=max_len,
                                    p=p, train=True, seed=42))
    assert out.shape == (max_len, d_model) and out.dtype == jnp.float32
    out_np = np.asarray(out)
    nz = out_np != 0.0
    np.testing.assert_allclose(out_np[nz], (ref / (1.0 - p))[nz], rtol=1e-5, atol=5e-5)
    zero_frac = 1.0 - nz.mean()
    assert 0.02 < zero_frac < 0.25, f"unexpected dropout rate {zero_frac}"

    print("KERNEL_OK")
</pallas_src>

<mosaic_0001>
module attributes {stable_mosaic.version = 11 : i64} {
  func.func @_pe_dropout_kernel(%arg0: i32, %arg1: memref<1x128xf32, #tpu.memory_space<vmem>>, %arg2: memref<1x128xf32, #tpu.memory_space<vmem>>, %arg3: memref<1x128xf32, #tpu.memory_space<vmem>>, %arg4: memref<16x128xf32, #tpu.memory_space<vmem>>) attributes {dimension_semantics = [#tpu.dimension_semantics<parallel>], iteration_bounds = array<i64: 1>, scalar_prefetch = 0 : i64, scratch_operands = 0 : i64, tpu.core_type = #tpu.core_type<tc>, window_params = [{pipeline_mode = #tpu.pipeline_mode<synchronous>, transform_indices = @transform_0, window_bounds = array<i64: 1, 128>}, {pipeline_mode = #tpu.pipeline_mode<synchronous>, transform_indices = @transform_1, window_bounds = array<i64: 1, 128>}, {pipeline_mode = #tpu.pipeline_mode<synchronous>, transform_indices = @transform_2, window_bounds = array<i64: 1, 128>}, {transform_indices = @transform_3, window_bounds = array<i64: 16, 128>}]} {
    %0 = tpu.iota {dimensions = array<i32: 0>} : vector<16x1xi32>
    %c16_i32 = arith.constant 16 : i32
    %1 = arith.muli %arg0, %c16_i32 : i32
    %2 = vector.broadcast %1 : i32 to vector<16x1xi32>
    %3 = arith.addi %0, %2 : vector<16x1xi32>
    %c4_i32 = arith.constant 4 : i32
    %4 = vector.broadcast %c4_i32 : i32 to vector<16x1xi32>
    %5 = arith.muli %3, %4 : vector<16x1xi32>
    %6 = arith.sitofp %5 : vector<16x1xi32> to vector<16x1xf32>
    %c0 = arith.constant 0 : index
    %c0_0 = arith.constant 0 : index
    %7 = vector.load %arg2[%c0, %c0_0] : memref<1x128xf32, #tpu.memory_space<vmem>>, vector<1x128xf32>
    %8 = vector.broadcast %6 : vector<16x1xf32> to vector<16x128xf32>
    %9 = vector.broadcast %7 : vector<1x128xf32> to vector<16x128xf32>
    %10 = arith.addf %8, %9 : vector<16x128xf32>
    %c0_1 = arith.constant 0 : index
    %c0_2 = arith.constant 0 : index
    %11 = vector.load %arg1[%c0_1, %c0_2] : memref<1x128xf32, #tpu.memory_space<vmem>>, vector<1x128xf32>
    %12 = vector.broadcast %11 : vector<1x128xf32> to vector<16x128xf32>
    %13 = arith.mulf %10, %12 : vector<16x128xf32>
    %c0_3 = arith.constant 0 : index
    %c0_4 = arith.constant 0 : index
    %14 = vector.load %arg3[%c0_3, %c0_4] : memref<1x128xf32, #tpu.memory_space<vmem>>, vector<1x128xf32>
    %15 = vector.broadcast %14 : vector<1x128xf32> to vector<16x128xf32>
    %16 = arith.addf %13, %15 : vector<16x128xf32>
    %17 = math.sin %16 : vector<16x128xf32>
    %c0_5 = arith.constant 0 : index
    %c0_6 = arith.constant 0 : index
    %18 = vector.load %arg4[%c0_5, %c0_6] : memref<16x128xf32, #tpu.memory_space<vmem>>, vector<16x128xf32>
    tpu.vector_store %arg4[%c0_5, %c0_6], %17 {strides = array<i32>} : memref<16x128xf32, #tpu.memory_space<vmem>>, vector<16x128xf32>,
    return
  }
  func.func @transform_0(%arg0: i32) -> (i32, i32) {
    %c0_i32 = arith.constant 0 : i32
    %c0_i32_0 = arith.constant 0 : i32
    %c0_i32_1 = arith.constant 0 : i32
    return %c0_i32, %c0_i32_0 : i32, i32
  }
  func.func @transform_1(%arg0: i32) -> (i32, i32) {
    %c0_i32 = arith.constant 0 : i32
    %c0_i32_0 = arith.constant 0 : i32
    %c0_i32_1 = arith.constant 0 : i32
    return %c0_i32, %c0_i32_0 : i32, i32
  }
  func.func @transform_2(%arg0: i32) -> (i32, i32) {
    %c0_i32 = arith.constant 0 : i32
    %c0_i32_0 = arith.constant 0 : i32
    %c0_i32_1 = arith.constant 0 : i32
    return %c0_i32, %c0_i32_0 : i32, i32
  }
  func.func @transform_3(%arg0: i32) -> (i32, i32) {
    %c0_i32 = arith.constant 0 : i32
    %c0_i32_0 = arith.constant 0 : i32
    return %arg0, %c0_i32 : i32, i32
  }
}

</mosaic_0001>

<bundles_post_ra>
// kernel: tpu_custom_call.1
= control target key start
LH: loop header
LB: loop body
LE: loop exit
PB: predicated region body
PF: predicated region fallthrough
CT: control target
= control target key end

     0   :  { %8 = vsyncpa [#allocation3], 0  ;;  %s720_s0 = inlined_call_operand.hbm [shape: f32[1,128], index: 0, kind: input, shape index: {}]   ;;  %s721_s1 = inlined_call_operand.hbm [shape: f32[1,128], index: 1, kind: input, shape index: {}]   ;;  %s722_s2 = inlined_call_operand.vmem [shape: f32[1,128], index: 2, kind: input, shape index: {}]   ;;  %s723_s3 = inlined_call_operand.hbm [shape: f32[16,128], index: 3, kind: output, shape index: {}]  }
   0x1   :  { %9 = vsyncpa [#allocation6], 0 }
   0x2   :  { %10 = vsyncpa [#allocation4], 0  ;;  %s16_s14 = sshll.u32 %s720_s0, 4  ;;  %s503_s15 = smov [#allocation2]   ;;  %s17_s14 = int_to_ptr.hbm [resolvable:$true] %s16_s14 }
   0x3   :  { %s18_s16 = sshll.u32 %s503_s15, 4  ;;  %s27_s19 = sshll.u32 %s721_s1, 4  ;;  %s19_s16 = int_to_ptr.vmem [resolvable:$true] %s18_s16  ;;  %s28_s19 = int_to_ptr.hbm [resolvable:$true] %s27_s19 }
   0x4   :  { %21 = dma.hbm_to_vmem [thread:$0]  %s17_s14, 16, %s19_s16, [#allocation3]  }
   0x5   :  { %s504_s20 = smov [#allocation5]  }
   0x6   :  { %s29_s21 = sshll.u32 %s504_s20, 4  ;;  %s30_s21 = int_to_ptr.vmem [resolvable:$true] %s29_s21 }
   0x7   :  { %32 = dma.hbm_to_vmem [thread:$0]  %s28_s19, 16, %s30_s21, [#allocation6]  }
   0x8   :  { %497 = dma.done.wait [#allocation3], 16  }
   0x9   :  { %498 = vsyncadd [#allocation3], 4294967280 }
   0xa   :  { %499 = dma.done.wait [#allocation6], 16  }
   0xb   :  { %500 = vsyncadd [#allocation6], 4294967280  ;;  %v43_v0 = vlaneseq  ;;  %v422_v6 = vld [vmem:[#allocation5] ss:$0 sm:$0xff]  ;;  %v423_v8 = vld [vmem:[#allocation2] ss:$0 sm:$0xff] }
   0xc   :  { %v424_v10 = vld [vmem:[%s722_s2] ss:$0 sm:$0xff]  ;;  %v505_v37 = vmov 683565275   ;;  %v506_v39 = vmov 2475754826  }
   0xd   :  { %v44_v1 = vshrl.u32 %v43_v0, 7  ;;  %v507_v41 = vmov 2131351028   ;;  %v508_v43 = vmov 2102212464   ;;  %s512_s2 = smov [#allocation7]  }
   0xe   :  { %v509_v45 = vmov 920167782   ;;  %v510_v54 = vmov 1326507024   ;;  %s388_s22 = sshll.u32 %s512_s2, 4  ;;  %s390_s25 = sshll.u32 %s723_s3, 4  ;;  %s389_s22 = int_to_ptr.vmem [resolvable:$true] %s388_s22  ;;  %s391_s25 = int_to_ptr.hbm [resolvable:$true] %s390_s25 }
   0xf   :  { %v45_v2 = vadd.s32 8, %v44_v1  ;;  %v50_v3 = vmul.u32 4, %v44_v1  ;;  %s513_s26 = smov 128   ;;  %s514_s27 = smov 8  }
  0x11   :  { %v51_v4 = vmul.u32 4, %v45_v2  ;;  %v52_v5 = vcvt.s32.f32 %v50_v3 }
  0x13   :  { %v53_v7 = vcvt.s32.f32 %v51_v4  ;;  %v58_v9 = vadd.f32 %v422_v6, %v52_v5 }
  0x15   :  { %v59_v11 = vadd.f32 %v422_v6, %v53_v7  ;;  %v64_v12 = vmul.f32 %v423_v8, %v58_v9 }
  0x17   :  { %v65_v13 = vmul.f32 %v423_v8, %v59_v11  ;;  %v544_v14 = vadd.f32 %v424_v10, %v64_v12 }
  0x19   :  { %v546_v15 = vadd.f32 %v424_v10, %v65_v13  ;;  %v72_v16 = vand.u32 2147483647, %v544_v14  ;;  %v75_v17 = vand.u32 2139095040, %v544_v14 }
  0x1b   :  { %v227_v18 = vand.u32 2147483647, %v546_v15  ;;  %v230_v19 = vand.u32 2139095040, %v546_v15  ;;  %v76_v20 = vshrl.u32 %v75_v17, 23  ;;  %v79_v21 = vand.u32 8388607, %v72_v16 }
  0x1d   :  { %v231_v22 = vshrl.u32 %v230_v19, 23  ;;  %v404_v23 = vadd.s32 4294967169, %v76_v20  ;;  %v80_v24 = vor.u32 8388608, %v79_v21  ;;  %v234_v26 = vand.u32 8388607, %v227_v18 }
  0x1f   :  { %v407_v25 = vadd.s32 4294967169, %v231_v22  ;;  %v82_v27 = vadd.s32 1, %v404_v23  ;;  %v556_v30 = vshll.u32 %v80_v24, 8  ;;  %v235_v31 = vor.u32 8388608, %v234_v26 }
  0x21   :  { %v237_v28 = vadd.s32 1, %v407_v25  ;;  %vm83_vm0 = vcmp.gt.s32.totalorder %v82_v27, 0  ;;  %v121_v47 = vand.u32 65535, %v556_v30  ;;  %v566_v48 = vshll.u32 %v235_v31, 8 }
  0x22   :  { %v84_v29 = vsel %vm83_vm0, %v82_v27, 0  ;;  %v122_v52 = vshrl.u32 %v556_v30, 16 }
  0x23   :  { %vm238_vm1 = vcmp.gt.s32.totalorder %v237_v28, 0  ;;  %v86_v32 = vand.u32 31, %v84_v29  ;;  %v558_v34 = vshrl.u32 %v84_v29, 5 }
  0x24   :  { %v239_v33 = vsel %vm238_vm1, %v237_v28, 0 }
  0x25   :  { %v560_v35 = vand.u32 31, %v239_v33  ;;  %v87_v36 = vsub.s32 32, %v86_v32  ;;  %v89_v38 = vshll.u32 %v505_v37, %v86_v32  ;;  %v92_v40 = vshll.u32 %v506_v39, %v86_v32 }
  0x26   :  { %v95_v42 = vshll.u32 %v507_v41, %v86_v32  ;;  %v98_v44 = vshll.u32 %v508_v43, %v86_v32  ;;  %v101_v46 = vshll.u32 %v509_v45, %v86_v32  ;;  %vm104_vm2 = vcmp.lt.s32.totalorder %v558_v34, 1 }
  0x27   :  { %v90_v49 = vshrl.u32 %v506_v39, %v87_v36  ;;  %v93_v50 = vshrl.u32 %v507_v41, %v87_v36  ;;  %v96_v51 = vshrl.u32 %v508_v43, %v87_v36  ;;  %v99_v53 = vshrl.u32 %v509_v45, %v87_v36 }
  0x28   :  { %v102_v55 = vshrl.u32 %v510_v54, %v87_v36  ;;  %vm107_vm3 = vcmp.lt.s32.totalorder %v558_v34, 4  ;;  %v575_v59 = vsub.s32 32, %v560_v35  ;;  %v88_v60 = vshrl.u32 %v505_v37, %v87_v36 }
  0x29   :  { %v91_v56 = vor.u32 %v90_v49, %v89_v38  ;;  %v94_v57 = vor.u32 %v93_v50, %v92_v40  ;;  %v97_v58 = vor.u32 %v96_v51, %v95_v42  ;;  %v100_v61 = vor.u32 %v99_v53, %v98_v44 }
  0x2a   :  { %v103_v62 = vor.u32 %v102_v55, %v101_v46  ;;  %vm106_vm4 = vcmp.lt.s32.totalorder %v558_v34, 3  ;;  %vm105_vm5 = vcmp.lt.s32.totalorder %v558_v34, 2  ;;  %v584_v1 = vshrl.u32 %v239_v33, 5 }
  0x2b   :  { %v112_v63 = vsel %vm104_vm2, %v91_v56, %v94_v57  ;;  %v116_v0 = vsel %vm104_vm2, %v94_v57, %v97_v58  ;;  %v113_v2 = vsel %vm107_vm3, %v100_v61, 920167782  ;;  %v244_v4 = vshll.u32 %v505_v37, %v560_v35 }
  0x2c   :  { %v117_v3 = vsel %vm107_vm3, %v103_v62, 1326507024  ;;  %v247_v5 = vshll.u32 %v506_v39, %v560_v35  ;;  %v109_v6 = vsel %vm107_vm3, %v97_v58, 2102212464  ;;  %v114_v7 = vsel %vm106_vm4, %v97_v58, %v113_v2 }
  0x2d   :  { %v118_v8 = vsel %vm106_vm4, %v100_v61, %v117_v3  ;;  %v245_v9 = vshrl.u32 %v506_v39, %v575_v59  ;;  %v108_v10 = vsel %vm104_vm2, %v88_v60, %v91_v56  ;;  %v115_v11 = vsel %vm105_vm5, %v112_v63, %v114_v7 }
  0x2e   :  { %v119_v12 = vsel %vm105_vm5, %v116_v0, %v118_v8  ;;  %v248_v13 = vshrl.u32 %v507_v41, %v575_v59  ;;  %v145_v20 = vand.u32 65535, %v115_v11  ;;  %v146_v21 = vshrl.u32 %v115_v11, 16 }
  0x2f   :  { %v123_v17 = vand.u32 65535, %v119_v12  ;;  %v124_v19 = vshrl.u32 %v119_v12, 16  ;;  %v110_v22 = vsel %vm106_vm4, %v94_v57, %v109_v6  ;;  %v609_v23 = vor.u32 %v245_v9, %v244_v4 }
  0x30   :  { %v611_v24 = vor.u32 %v248_v13, %v247_v5  ;;  %v250_v25 = vshll.u32 %v507_v41, %v560_v35  ;;  %v251_v29 = vshrl.u32 %v508_v43, %v575_v59  ;;  %v147_v32 = vmul.u32 %v145_v20, %v121_v47 }
  0x31   :  { %v125_v26 = vmul.u32 %v123_v17, %v121_v47  ;;  %v126_v27 = vmul.u32 %v124_v19, %v121_v47  ;;  %v127_v28 = vmul.u32 %v123_v17, %v122_v52  ;;  %v128_v31 = vmul.u32 %v124_v19, %v122_v52 }
  0x32   :  { %v148_v33 = vmul.u32 %v146_v21, %v121_v47  ;;  %v149_v36 = vmul.u32 %v145_v20, %v122_v52  ;;  %v150_v42 = vmul.u32 %v146_v21, %v122_v52  ;;  %v253_v53 = vshll.u32 %v508_v43, %v560_v35 }
  0x33   :  { %v129_v38 = vshll.u32 %v126_v27, 16  ;;  %v130_v39 = vshrl.u32 %v126_v27, 16  ;;  %v131_v40 = vshll.u32 %v127_v28, 16  ;;  %v132_v44 = vshrl.u32 %v127_v28, 16 }
  0x34   :  { %v151_v46 = vshll.u32 %v148_v33, 16  ;;  %v152_v49 = vshrl.u32 %v148_v33, 16  ;;  %v153_v50 = vshll.u32 %v149_v36, 16  ;;  %v154_v51 = vshrl.u32 %v149_v36, 16 }
  0x35   :  { %vm133_vm6 = vc.u32 %v125_v26, %v129_v38  ;;  %v135_v41 = vadd.s32 %v129_v38, %v125_v26  ;;  %v511_v55 = vmov 0   ;;  %v254_v57 = vshrl.u32 %v509_v45, %v575_v59 }
  0x36   :  { %v134_v56 = vsel %vm133_vm6, 1, %v511_v55  ;;  %vm155_vm7 = vc.u32 %v147_v32, %v151_v46  ;;  %v157_v47 = vadd.s32 %v151_v46, %v147_v32  ;;  %v256_v60 = vshll.u32 %v509_v45, %v560_v35 }
  0x37   :  { %v136_v58 = vadd.s32 %v134_v56, %v128_v31  ;;  %vm137_vm8 = vc.u32 %v135_v41, %v131_v40  ;;  %v156_v52 = vsel %vm155_vm7, 1, %v511_v55  ;;  %v252_v43 = vor.u32 %v251_v29, %v250_v25 }
  0x38   :  { %v138_v61 = vsel %vm137_vm8, 1, %v511_v55  ;;  %v158_v62 = vadd.s32 %v156_v52, %v150_v42  ;;  %vm159_vm9 = vc.u32 %v157_v47, %v153_v50  ;;  %v255_v2 = vor.u32 %v254_v57, %v253_v53 }
  0x39   :  { %v140_v63 = vadd.s32 %v138_v61, %v136_v58  ;;  %v160_v0 = vsel %vm159_vm9, 1, %v511_v55  ;;  %v257_v3 = vshrl.u32 %v510_v54, %v575_v59  ;;  %v628_v4 = vadd.s32 %v157_v47, %v153_v50 }
  0x3a   :  { %v162_v5 = vadd.s32 %v160_v0, %v158_v62  ;;  %vm259_vm10 = vcmp.lt.s32.totalorder %v584_v1, 1  ;;  %vm261_vm11 = vcmp.lt.s32.totalorder %v584_v1, 3  ;;  %vm260_vm12 = vcmp.lt.s32.totalorder %v584_v1, 2 }
  0x3b   :  { %v141_v35 = vadd.s32 %v140_v63, %v130_v39  ;;  %v258_v45 = vor.u32 %v257_v3, %v256_v60  ;;  %vm262_vm13 = vcmp.lt.s32.totalorder %v584_v1, 4  ;;  %v111_v6 = vsel %vm105_vm5, %v108_v10, %v110_v22 }
  0x3c   :  { %v163_v7 = vadd.s32 %v162_v5, %v152_v49  ;;  %v267_v54 = vsel %vm259_vm10, %v609_v23, %v611_v24  ;;  %v268_v8 = vsel %vm262_vm13, %v255_v2, 920167782  ;;  %v271_v12 = vsel %vm259_vm10, %v611_v24, %v252_v43 }
  0x3d   :  { %v642_v9 = vadd.s32 %v141_v35, %v132_v44  ;;  %v269_v11 = vsel %vm261_vm11, %v252_v43, %v268_v8  ;;  %v276_v34 = vand.u32 65535, %v566_v48  ;;  %v272_v17 = vsel %vm262_vm13, %v258_v45, 1326507024 }
  0x3e   :  { %v164_v10 = vadd.s32 %v163_v7, %v154_v51  ;;  %v270_v13 = vsel %vm260_vm12, %v267_v54, %v269_v11  ;;  %v277_v19 = vshrl.u32 %v566_v48, 16  ;;  %v165_v20 = vmul.u32 %v556_v30, %v111_v6 }
  0x3f   :  { %vm167_vm14 = vc.u32 %v642_v9, %v628_v4  ;;  %v273_v21 = vsel %vm261_vm11, %v255_v2, %v272_v17  ;;  %v300_v22 = vand.u32 65535, %v270_v13  ;;  %v301_v27 = vshrl.u32 %v270_v13, 16 }
  0x40   :  { %v168_v25 = vadd.s32 1, %v164_v10  ;;  %v274_v26 = vsel %vm260_vm12, %v271_v12, %v273_v21  ;;  %v243_v32 = vshrl.u32 %v505_v37, %v575_v59  ;;  %v264_v49 = vsel %vm262_vm13, %v252_v43, 2102212464 }
  0x41   :  { %v278_v28 = vand.u32 65535, %v274_v26  ;;  %v279_v29 = vshrl.u32 %v274_v26, 16  ;;  %v303_v33 = vmul.u32 %v301_v27, %v276_v34  ;;  %v304_v30 = vmul.u32 %v300_v22, %v277_v19 }
  0x42   :  { %v169_v31 = vsel %vm167_vm14, %v168_v25, %v164_v10  ;;  %v302_v40 = vmul.u32 %v300_v22, %v276_v34  ;;  %v263_v51 = vsel %vm259_vm10, %v243_v32, %v609_v23  ;;  %v305_v37 = vmul.u32 %v301_v27, %v277_v19 }
  0x43   :  { %v170_v36 = vadd.s32 %v169_v31, %v165_v20  ;;  %v280_v38 = vmul.u32 %v278_v28, %v276_v34  ;;  %v281_v39 = vmul.u32 %v279_v29, %v276_v34  ;;  %v282_v42 = vmul.u32 %v278_v28, %v277_v19 }
  0x44   :  { %v306_v44 = vshll.u32 %v303_v33, 16  ;;  %v283_v50 = vmul.u32 %v279_v29, %v277_v19  ;;  %v308_v59 = vshll.u32 %v304_v30, 16  ;;  %v265_v57 = vsel %vm261_vm11, %v611_v24, %v264_v49 }
  0x45   :  { %v171_v46 = vadd.s32 536870912, %v170_v36  ;;  %v284_v41 = vshll.u32 %v281_v39, 16  ;;  %v286_v53 = vshll.u32 %v282_v42, 16  ;;  %v285_v23 = vshrl.u32 %v281_v39, 16 }
  0x46   :  { %vm310_vm0 = vc.u32 %v302_v40, %v306_v44  ;;  %v312_v60 = vadd.s32 %v306_v44, %v302_v40  ;;  %v307_v63 = vshrl.u32 %v303_v33, 16  ;;  %v287_v3 = vshrl.u32 %v282_v42, 16 }
  0x47   :  { %v669_v56 = vshrl.u32 %v171_v46, 30  ;;  %vm288_vm15 = vc.u32 %v280_v38, %v284_v41  ;;  %v290_v47 = vadd.s32 %v284_v41, %v280_v38  ;;  %v311_v52 = vsel %vm310_vm0, 1, %v511_v55 }
  0x48   :  { %v289_v58 = vsel %vm288_vm15, 1, %v511_v55  ;;  %v313_v0 = vadd.s32 %v311_v52, %v305_v37  ;;  %vm314_vm2 = vc.u32 %v312_v60, %v308_v59  ;;  %v309_v35 = vshrl.u32 %v304_v30, 16 }
  0x49   :  { %v173_v61 = vshll.u32 %v669_v56, 30  ;;  %v291_v62 = vadd.s32 %v289_v58, %v283_v50  ;;  %vm292_vm1 = vc.u32 %v290_v47, %v286_v53  ;;  %v315_v24 = vsel %vm314_vm2, 1, %v511_v55 }
  0x4a   :  { %v293_v43 = vsel %vm292_vm1, 1, %v511_v55  ;;  %v317_v45 = vadd.s32 %v315_v24, %v313_v0  ;;  %v316_v54 = vadd.s32 %v312_v60, %v308_v59  ;;  %v266_v8 = vsel %vm260_vm12, %v263_v51, %v265_v57 }
  0x4b   :  { %v174_v2 = vsub.s32 %v170_v36, %v173_v61  ;;  %v295_v5 = vadd.s32 %v293_v43, %v291_v62  ;;  %v320_v17 = vmul.u32 %v566_v48, %v266_v8  ;;  %v166_v55 = vadd.s32 %v628_v4, %v642_v9 }
  0x4c   :  { %v318_v11 = vadd.s32 %v317_v45, %v307_v63  ;;  %v196_v42 = vsub.s32 4, %v669_v56  ;;  %vm74_vm7 = vcmp.lt.s32.totalorder %v544_v14, 0  ;;  %vm691_vm8 = vcmp.le.f32.partialorder %v72_v16, 0.7853982 }
  0x4d   :  { %vm175_vm3 = vcmp.lt.s32.totalorder %v174_v2, 0  ;;  %v176_v6 = vsub.s32 0, %v174_v2  ;;  %v296_v7 = vadd.s32 %v295_v5, %v285_v23  ;;  %vm229_vm11 = vcmp.lt.s32.totalorder %v546_v15, 0 }
  0x4e   :  { %v319_v13 = vadd.s32 %v318_v11, %v309_v35  ;;  %v197_v51 = vsel %vm74_vm7, %v196_v42, %v669_v56  ;;  %vm705_vm13 = vcmp.le.f32.partialorder %v227_v18, 0.7853982  ;;  %vm215_vm15 = vweird.f32 %v544_v14 }
  0x4f   :  { %v177_v12 = vsel %vm175_vm3, %v176_v6, %v174_v2  ;;  %v297_v34 = vadd.s32 %v296_v7, %v287_v3  ;;  %v199_v57 = vsel %vm691_vm8, 0, %v197_v51  ;;  %vm370_vm3 = vweird.f32 %v546_v15 }
  0x50   :  { %v178_v10 = vclz %v177_v12  ;;  %v323_v20 = vadd.s32 1, %v319_v13  ;;  %v216_v63 = vadd.s32 3, %v199_v57 }
  0x51   :  { %vm322_vm4 = vc.u32 %v297_v34, %v316_v54  ;;  %v321_v47 = vadd.s32 %v316_v54, %v297_v34 }
  0x52   :  { %v405_v19 = vadd.s32 4294967294, %v178_v10  ;;  %v324_v21 = vsel %vm322_vm4, %v323_v20, %v319_v13  ;;  %v217_v6 = vand.u32 3, %v216_v63 }
  0x53   :  { %v325_v25 = vadd.s32 %v324_v21, %v320_v17 }
  0x54   :  { %vm406_vm5 = vcmp.lt.s32.totalorder %v405_v19, 0  ;;  %vm222_vm10 = vcmp.eq.s32.totalorder %v217_v6, 2  ;;  %vm219_vm12 = vcmp.eq.s32.totalorder %v217_v6, 0  ;;  %vm218_vm14 = vcmp.lt.s32.totalorder %v217_v6, 2 }
  0x55   :  { %v181_v22 = vsel %vm406_vm5, 0, %v405_v19  ;;  %v326_v28 = vadd.s32 536870912, %v325_v25 }
  0x56   :  { %v182_v26 = vsub.s32 32, %v181_v22  ;;  %v183_v1 = vshll.u32 %v174_v2, %v181_v22  ;;  %v186_v27 = vsub.s32 4294967266, %v181_v22 }
  0x57   :  { %v684_v32 = vshrl.u32 %v326_v28, 30 }
  0x58   :  { %v184_v29 = vshrl.u32 %v166_v55, %v182_v26  ;;  %v187_v31 = vadd.s32 127, %v186_v27 }
  0x59   :  { %v328_v30 = vshll.u32 %v684_v32, 30  ;;  %v351_v20 = vsub.s32 4, %v684_v32 }
  0x5a   :  { %v185_v33 = vor.u32 %v184_v29, %v183_v1  ;;  %v188_v48 = vshll.u32 %v187_v31, 23 }
  0x5b   :  { %v329_v39 = vsub.s32 %v325_v25, %v328_v30  ;;  %v352_v27 = vsel %vm229_vm11, %v351_v20, %v684_v32 }
  0x5c   :  { %v189_v36 = vor.u32 4788187, %v188_v48  ;;  %v192_v38 = vcvt.s32.f32 %v185_v33  ;;  %v354_v33 = vsel %vm705_vm13, 0, %v352_v27 }
  0x5d   :  { %vm330_vm6 = vcmp.lt.s32.totalorder %v329_v39, 0  ;;  %v331_v9 = vsub.s32 0, %v329_v39 }
  0x5e   :  { %v190_v4 = vand.u32 2147483647, %v189_v36 }
  0x5f   :  { %v332_v44 = vsel %vm330_vm6, %v331_v9, %v329_v39 }
  0x60   :  { %v193_v40 = vmul.f32 %v192_v38, %v190_v4  ;;  %v333_v50 = vclz %v332_v44 }
  0x62   :  { %v194_v49 = vxor.u32 2147483648, %v193_v40  ;;  %v408_v53 = vadd.s32 4294967294, %v333_v50 }
  0x64   :  { %v195_v41 = vsel %vm74_vm7, %v194_v49, %v193_v40  ;;  %vm409_vm9 = vcmp.lt.s32.totalorder %v408_v53, 0 }
  0x65   :  { %v198_v37 = vsel %vm691_vm8, %v544_v14, %v195_v41  ;;  %v336_v16 = vsel %vm409_vm9, 0, %v408_v53  ;;  %v371_v14 = vadd.s32 3, %v354_v33 }
  0x66   :  { %v200_v59 = vmul.f32 %v198_v37, %v198_v37  ;;  %v337_v60 = vsub.s32 32, %v336_v16  ;;  %v338_v61 = vshll.u32 %v329_v39, %v336_v16  ;;  %v341_v23 = vsub.s32 4294967266, %v336_v16 }
  0x67   :  { %v372_v40 = vand.u32 3, %v371_v14 }
  0x68   :  { %v201_v58 = vmul.f32 -0.001358992, %v200_v59  ;;  %v208_v52 = vmul.f32 -0.00019511016, %v200_v59  ;;  %v339_v56 = vshrl.u32 %v321_v47, %v337_v60  ;;  %v342_v0 = vadd.s32 127, %v341_v23 }
  0x69   :  { %vm377_vm0 = vcmp.eq.s32.totalorder %v372_v40, 2  ;;  %vm374_vm1 = vcmp.eq.s32.totalorder %v372_v40, 0  ;;  %vm373_vm2 = vcmp.lt.s32.totalorder %v372_v40, 2 }
  0x6a   :  { %v202_v62 = vadd.f32 0.041655596, %v201_v58  ;;  %v209_v43 = vadd.f32 0.008332121, %v208_v52  ;;  %v340_v5 = vor.u32 %v339_v56, %v338_v61  ;;  %v343_v24 = vshll.u32 %v342_v0, 23 }
  0x6c   :  { %v203_v2 = vmul.f32 %v202_v62, %v200_v59  ;;  %v210_v3 = vmul.f32 %v209_v43, %v200_v59  ;;  %v344_v7 = vor.u32 4788187, %v343_v24  ;;  %v347_v54 = vcvt.s32.f32 %v340_v5 }
  0x6e   :  { %v204_v35 = vadd.f32 -0.4999988, %v203_v2  ;;  %v211_v45 = vadd.f32 -0.16666654, %v210_v3  ;;  %v345_v12 = vand.u32 2147483647, %v344_v7 }
  0x70   :  { %v205_v8 = vmul.f32 %v204_v35, %v200_v59  ;;  %v212_v11 = vmul.f32 %v211_v45, %v200_v59  ;;  %v348_v13 = vmul.f32 %v347_v54, %v345_v12 }
  0x72   :  { %v206_v34 = vadd.f32 1.0, %v205_v8  ;;  %v213_v10 = vadd.f32 1.0, %v212_v11  ;;  %v349_v21 = vxor.u32 2147483648, %v348_v13 }
  0x74   :  { %v214_v17 = vmul.f32 %v213_v10, %v198_v37  ;;  %v223_v19 = vxor.u32 2147483648, %v206_v34  ;;  %v350_v26 = vsel %vm229_vm11, %v349_v21, %v348_v13 }
  0x75   :  { %v353_v28 = vsel %vm705_vm13, %v546_v15, %v350_v26 }
  0x76   :  { %v220_v22 = vxor.u32 2147483648, %v214_v17  ;;  %v224_v25 = vsel %vm222_vm10, %v223_v19, %v214_v17  ;;  %v355_v31 = vmul.f32 %v353_v28, %v353_v28 }
  0x78   :  { %v221_v1 = vsel %vm219_vm12, %v206_v34, %v220_v22  ;;  %v356_v48 = vmul.f32 -0.001358992, %v355_v31  ;;  %v363_v30 = vmul.f32 -0.00019511016, %v355_v31 }
  0x79   :  { %v225_v29 = vsel %vm218_vm14, %v221_v1, %v224_v25 }
  0x7a   :  { %v226_v18 = vsel %vm215_vm15, nan, %v225_v29  ;;  %v357_v36 = vadd.f32 0.041655596, %v356_v48  ;;  %v364_v38 = vadd.f32 0.008332121, %v363_v30 }
  0x7b   :  { %382 = vst [vmem:[#allocation7] sm:$0xff] %v226_v18 }
  0x7c   :  { %v358_v39 = vmul.f32 %v357_v36, %v355_v31  ;;  %v365_v4 = vmul.f32 %v364_v38, %v355_v31 }
  0x7e   :  { %v359_v9 = vadd.f32 -0.4999988, %v358_v39  ;;  %v366_v32 = vadd.f32 -0.16666654, %v365_v4 }
  0x80   :  { %v360_v42 = vmul.f32 %v359_v9, %v355_v31  ;;  %v367_v44 = vmul.f32 %v366_v32, %v355_v31 }
  0x82   :  { %v361_v46 = vadd.f32 1.0, %v360_v42  ;;  %v368_v49 = vadd.f32 1.0, %v367_v44 }
  0x84   :  { %v369_v50 = vmul.f32 %v368_v49, %v353_v28  ;;  %v378_v41 = vxor.u32 2147483648, %v361_v46 }
  0x86   :  { %v375_v51 = vxor.u32 2147483648, %v369_v50  ;;  %v379_v53 = vsel %vm377_vm0, %v378_v41, %v369_v50 }
  0x88   :  { %v376_v37 = vsel %vm374_vm1, %v361_v46, %v375_v51 }
  0x89   :  { %v380_v59 = vsel %vm373_vm2, %v376_v37, %v379_v53 }
  0x8a   :  { %v381_v47 = vsel %vm370_vm3, nan, %v380_v59 }
  0x8b   :  { %383 = vst [vmem:[#allocation7 + $0x8] sm:$0xff] %v381_v47 }
  0x8c   :  { %396 = dma.vmem_to_hbm [thread:$0]  %s389_s22, 256, %s391_s25, [#allocation4], %s513_s26, %s513_s26, %s514_s27  }
  0x8d   :  { %501 = dma.done.wait [#allocation4], 256  }
  0x8e   :  { %502 = vsyncadd [#allocation4], 4294967040 }
  0x8f   :  { %401 = vsyncpa [#allocation3], 1 }
  0x90   :  { %402 = vsyncpa [#allocation6], 1 }
  0x91   :  { %403 = vsyncpa [#allocation4], 1 }

</bundles_post_ra>
